<compile_context>
chip_gen: v6e
topology: v6e:2x2x1
jax: 0.10.0
libtpu: 0.0.40
codegen_flags: <defaults>
</compile_context>

<pallas_src>
import math

import jax
import jax.numpy as jnp
from jax.experimental import pallas as pl
from jax.experimental.pallas import tpu as pltpu

BN_EPS = 1e-5


def _round_up(x, m):
    return ((x + m - 1) // m) * m


# ---------------------------------------------------------------------------
# Parameter construction: packed slabs + static meta
# ---------------------------------------------------------------------------
def _linear_init(key, in_s, out_s):
    kw, kb = jax.random.split(key)
    bound = 1.0 / math.sqrt(in_s)
    w = jax.random.uniform(kw, (in_s, out_s), jnp.float32, -bound, bound)
    b = jax.random.uniform(kb, (out_s,), jnp.float32, -bound, bound)
    return w, b


def init_vae_params(key, encoder_layer_sizes, latent_size, decoder_layer_sizes,
                    conditional=False, conditional_size=0):
    """Builds packed parameter slabs + static meta for the fused VAE kernel."""
    cond = conditional_size if conditional else 0

    mats, vecs = [], []

    def add_mat(w):
        mats.append(w)
        return len(mats) - 1

    def add_vec(v):
        vecs.append(v)
        return len(vecs) - 1

    keys = iter(jax.random.split(key, 64))

    # ---- Encoder MLP: Linear (no bias; cancelled by BN) -> BN -> ReLU ----
    enc_sizes = list(encoder_layer_sizes)
    enc_sizes[0] += cond
    enc_layers = []
    for li, (i_s, o_s) in enumerate(zip(enc_sizes[:-1], enc_sizes[1:])):
        w, _ = _linear_init(next(keys), i_s, o_s)
        mi = add_mat(w)
        g = add_vec(jnp.ones((o_s,), jnp.float32))
        b = add_vec(jnp.zeros((o_s,), jnp.float32))
        in_c = cond if li == 0 else 0
        enc_layers.append((mi, i_s - in_c, in_c, o_s, g, b))
    # Packed dual head: [means | log_var] -> one MXU push.
    wm, bm = _linear_init(next(keys), enc_sizes[-1], latent_size)
    wv, bv = _linear_init(next(keys), enc_sizes[-1], latent_size)
    enc_head = (add_mat(jnp.concatenate([wm, wv], axis=1)),
                enc_sizes[-1],
                add_vec(jnp.concatenate([bm, bv], axis=0)))

    # ---- Decoder MLP: Linear -> BN -> ReLU (last layer: Tanh) ----
    dec_in0 = latent_size + cond
    dec_ins = [dec_in0] + list(decoder_layer_sizes[:-1])
    dec_layers = []
    for li, (i_s, o_s) in enumerate(zip(dec_ins, decoder_layer_sizes)):
        w, _ = _linear_init(next(keys), i_s, o_s)
        mi = add_mat(w)
        g = add_vec(jnp.ones((o_s,), jnp.float32))
        b = add_vec(jnp.zeros((o_s,), jnp.float32))
        in_c = cond if li == 0 else 0
        dec_layers.append((mi, i_s - in_c, in_c, o_s, g, b))
    wm, bm = _linear_init(next(keys), decoder_layer_sizes[-1], latent_size)
    wv, bv = _linear_init(next(keys), decoder_layer_sizes[-1], latent_size)
    dec_head = (add_mat(jnp.concatenate([wm, wv], axis=1)),
                decoder_layer_sizes[-1],
                add_vec(jnp.concatenate([bm, bv], axis=0)))

    # ---- Pack everything into two slabs (2 DMAs instead of ~20) ----
    max_in = max(w.shape[0] for w in mats)
    max_out = max(w.shape[1] for w in mats)
    w_slab = jnp.stack([
        jnp.pad(w, ((0, max_in - w.shape[0]), (0, max_out - w.shape[1])))
        for w in mats]).astype(jnp.bfloat16)
    vec_w = _round_up(max(v.shape[0] for v in vecs), 128)   # lane-dense rows
    vec_slab = jnp.stack([jnp.pad(v, (0, vec_w - v.shape[0])) for v in vecs])

    params = {"w_slab": w_slab, "vec_slab": vec_slab}
    meta = dict(latent=latent_size, conditional=bool(conditional), cond=cond,
                dec_last=decoder_layer_sizes[-1],
                enc_layers=tuple(enc_layers), enc_head=enc_head,
                dec_layers=tuple(dec_layers), dec_head=dec_head)
    return params, meta


# ---------------------------------------------------------------------------
# Fused VAE forward kernel (encoder -> reparameterize -> decoder)
# ---------------------------------------------------------------------------
def _make_vae_kernel(meta):
    L = meta["latent"]
    conditional = meta["conditional"]
    enc_layers = meta["enc_layers"]
    enc_head = meta["enc_head"]
    dec_layers = meta["dec_layers"]
    dec_head = meta["dec_head"]
    n_dec = len(dec_layers)

    def kernel(*refs):
        if conditional:
            x_ref, eps_ref, c_ref, w_ref, v_ref, enc_out_ref, dec_out_ref = refs
        else:
            x_ref, eps_ref, w_ref, v_ref, enc_out_ref, dec_out_ref = refs
            c_ref = None

        def dot_bf16(a, w):
            return jnp.dot(a.astype(jnp.bfloat16), w,
                           preferred_element_type=jnp.float32)

        def linear(h, c, mat_idx, in_main, in_cond, out_s):
            w = w_ref[mat_idx]                      # (MAX_IN, MAX_OUT) bf16
            y = dot_bf16(h, w[:in_main, :out_s])
            if in_cond:                             # split-matmul CVAE path
                y = y + dot_bf16(c, w[in_main:in_main + in_cond, :out_s])
            return y

        def vec(row, width):
            return v_ref[pl.ds(row, 1), :width]     # (1, width) f32

        def bn_act(y, g_row, b_row, out_s, act):
            # BatchNorm (training mode, biased var), folded into a single FMA.
            m = jnp.mean(y, axis=0, keepdims=True)
            msq = jnp.mean(y * y, axis=0, keepdims=True)
            var = jnp.maximum(msq - m * m, 0.0)
            scale = vec(g_row, out_s) * jax.lax.rsqrt(var + BN_EPS)
            shift = vec(b_row, out_s) - m * scale
            y = y * scale + shift
            return jnp.tanh(y) if act == "tanh" else jnp.maximum(y, 0.0)

        x = x_ref[...]
        c = c_ref[...] if conditional else None

        # ----------------------------- Encoder -----------------------------
        h = x
        for (mi, in_m, in_c, out_s, g_row, b_row) in enc_layers:
            h = bn_act(linear(h, c, mi, in_m, in_c, out_s),
                       g_row, b_row, out_s, "relu")
        mi, in_s, b_row = enc_head
        heads = linear(h, None, mi, in_s, 0, 2 * L) + vec(b_row, 2 * L)
        means = heads[:, :L]
        log_var = heads[:, L:]
        z = means + eps_ref[...] * jnp.exp(0.5 * log_var)    # reparameterize
        # Single lane-dense store: [means | log_var | z]
        enc_out_ref[...] = jnp.concatenate([heads, z], axis=-1)

        # ----------------------------- Decoder -----------------------------
        h = z                                   # z never leaves VMEM/vregs
        for i, (mi, in_m, in_c, out_s, g_row, b_row) in enumerate(dec_layers):
            act = "tanh" if i == n_dec - 1 else "relu"
            h = bn_act(linear(h, c, mi, in_m, in_c, out_s),
                       g_row, b_row, out_s, act)
        mi, in_s, b_row = dec_head
        dheads = linear(h, None, mi, in_s, 0, 2 * L) + vec(b_row, 2 * L)
        # Single lane-dense store: [recon_x | means_d | log_var_d]
        dec_out_ref[...] = jnp.concatenate([h, dheads], axis=-1)

    return kernel


# ---------------------------------------------------------------------------
# Wrapper: one pallas_call, whole arrays in VMEM (tiny shapes -> grid=())
# ---------------------------------------------------------------------------
def vae_forward(params, meta, x, eps, c=None):
    B = x.shape[0]
    L = meta["latent"]
    dec_last = meta["dec_last"]
    conditional = meta["conditional"]

    args = [x, eps]
    if conditional:
        args.append(c)
    args += [params["w_slab"], params["vec_slab"]]

    out_shape = (jax.ShapeDtypeStruct((B, 3 * L), jnp.float32),
                 jax.ShapeDtypeStruct((B, dec_last + 2 * L), jnp.float32))

    # Advisory cost estimate for the XLA scheduler.
    flops = 0
    for (_, in_m, in_c, out_s, _, _) in meta["enc_layers"] + meta["dec_layers"]:
        flops += 2 * B * (in_m + in_c) * out_s
    flops += 2 * B * meta["enc_head"][1] * 2 * L
    flops += 2 * B * meta["dec_head"][1] * 2 * L
    transcendentals = B * (L + dec_last)          # exp (reparam) + tanh
    bytes_accessed = sum(int(a.size) * a.dtype.itemsize for a in args)
    bytes_accessed += sum(math.prod(s.shape) * 4 for s in out_shape)

    vmem = pl.BlockSpec(memory_space=pltpu.MemorySpace.VMEM)
    enc_out, dec_out = pl.pallas_call(
        _make_vae_kernel(meta),
        out_shape=out_shape,
        in_specs=[vmem] * len(args),
        out_specs=(vmem, vmem),
        compiler_params=pltpu.CompilerParams(vmem_limit_bytes=32 * 1024 * 1024),
        cost_estimate=pl.CostEstimate(flops=flops,
                                      transcendentals=transcendentals,
                                      bytes_accessed=bytes_accessed),
    )(*args)

    means_e = enc_out[:, :L]
    log_var_e = enc_out[:, L:2 * L]
    z = enc_out[:, 2 * L:]
    recon_x = dec_out[:, :dec_last]
    means_d = dec_out[:, dec_last:dec_last + L]
    log_var_d = dec_out[:, dec_last + L:]
    return recon_x, z, means_e, log_var_e, means_d, log_var_d


# ---------------------------------------------------------------------------
# Pure-JAX reference (identical math, reads the same packed slabs)
# ---------------------------------------------------------------------------
def vae_forward_ref(params, meta, x, eps, c=None):
    w_slab, v_slab = params["w_slab"], params["vec_slab"]
    L = meta["latent"]

    def dot_bf16(a, w):
        return jnp.dot(a.astype(jnp.bfloat16), w,
                       preferred_element_type=jnp.float32)

    def linear(h, c_, mi, in_m, in_c, out_s):
        w = w_slab[mi]
        y = dot_bf16(h, w[:in_m, :out_s])
        if in_c:
            y = y + dot_bf16(c_, w[in_m:in_m + in_c, :out_s])
        return y

    def vec(row, width):
        return v_slab[row:row + 1, :width]

    def bn_act(y, g_row, b_row, out_s, act):
        m = jnp.mean(y, axis=0, keepdims=True)
        var = jnp.maximum(jnp.mean(y * y, axis=0, keepdims=True) - m * m, 0.0)
        scale = vec(g_row, out_s) * jax.lax.rsqrt(var + BN_EPS)
        shift = vec(b_row, out_s) - m * scale
        y = y * scale + shift
        return jnp.tanh(y) if act == "tanh" else jnp.maximum(y, 0.0)

    h = x
    for (mi, in_m, in_c, out_s, g, b) in meta["enc_layers"]:
        h = bn_act(linear(h, c, mi, in_m, in_c, out_s), g, b, out_s, "relu")
    mi, in_s, b_row = meta["enc_head"]
    heads = linear(h, None, mi, in_s, 0, 2 * L) + vec(b_row, 2 * L)
    means_e, log_var_e = heads[:, :L], heads[:, L:]
    z = means_e + eps * jnp.exp(0.5 * log_var_e)

    h = z
    n_dec = len(meta["dec_layers"])
    for i, (mi, in_m, in_c, out_s, g, b) in enumerate(meta["dec_layers"]):
        act = "tanh" if i == n_dec - 1 else "relu"
        h = bn_act(linear(h, c, mi, in_m, in_c, out_s), g, b, out_s, act)
    mi, in_s, b_row = meta["dec_head"]
    dheads = linear(h, None, mi, in_s, 0, 2 * L) + vec(b_row, 2 * L)
    return h, z, means_e, log_var_e, dheads[:, :L], dheads[:, L:]


# ---------------------------------------------------------------------------
# Main
# ---------------------------------------------------------------------------
if __name__ == "__main__":
    B = 8
    encoder_layer_sizes = [16, 32]   # input 16 -> hidden 32
    latent_size = 8
    decoder_layer_sizes = [32, 16]   # latent 8 -> 32 -> recon 16

    root = jax.random.PRNGKey(0)
    k_params, k_params_c, k_x, k_eps, k_c = jax.random.split(root, 5)

    x = jax.random.normal(k_x, (B, encoder_layer_sizes[0]), jnp.float32)
    # Deterministic gaussian noise standing in for torch.randn_like.
    eps = jax.random.normal(k_eps, (B, latent_size), jnp.float32)

    # ---- plain VAE ----
    params, meta = init_vae_params(k_params, encoder_layer_sizes, latent_size,
                                   decoder_layer_sizes)
    outs = jax.block_until_ready(vae_forward(params, meta, x, eps))
    refs = vae_forward_ref(params, meta, x, eps)

    recon_x, z, m_e, lv_e, m_d, lv_d = outs
    assert recon_x.shape == (B, decoder_layer_sizes[-1])
    assert z.shape == (B, latent_size)
    assert m_e.shape == lv_e.shape == (B, latent_size)
    assert m_d.shape == lv_d.shape == (B, latent_size)
    for o, r in zip(outs, refs):
        assert jnp.all(jnp.isfinite(o))
        assert jnp.allclose(o, r, rtol=2e-2, atol=2e-2)

    # ---- conditional VAE (c passed separately; split-matmul in kernel) ----
    cond_size = 4
    params_c, meta_c = init_vae_params(k_params_c, encoder_layer_sizes,
                                       latent_size, decoder_layer_sizes,
                                       conditional=True,
                                       conditional_size=cond_size)
    c = jax.random.normal(k_c, (B, cond_size), jnp.float32)
    outs_c = jax.block_until_ready(vae_forward(params_c, meta_c, x, eps, c))
    refs_c = vae_forward_ref(params_c, meta_c, x, eps, c)
    for o, r in zip(outs_c, refs_c):
        assert jnp.all(jnp.isfinite(o))
        assert jnp.allclose(o, r, rtol=2e-2, atol=2e-2)

    print("KERNEL_OK")
</pallas_src>

<mosaic_0001>
module attributes {stable_mosaic.version = 11 : i64} {
  func.func @kernel(%arg0: memref<8x16xf32, #tpu.memory_space<vmem>>, %arg1: memref<8x8xf32, #tpu.memory_space<vmem>>, %arg2: memref<5x32x32xbf16, #tpu.memory_space<vmem>>, %arg3: memref<8x128xf32, #tpu.memory_space<vmem>>, %arg4: memref<8x24xf32, #tpu.memory_space<vmem>>, %arg5: memref<8x32xf32, #tpu.memory_space<vmem>>) attributes {dimension_semantics = [], scalar_prefetch = 0 : i64, scratch_operands = 0 : i64, tpu.core_type = #tpu.core_type<tc>} {
    %c0 = arith.constant 0 : index
    %c0_0 = arith.constant 0 : index
    %0 = vector.load %arg0[%c0, %c0_0] : memref<8x16xf32, #tpu.memory_space<vmem>>, vector<8x16xf32>
    %c0_1 = arith.constant 0 : index
    %c0_2 = arith.constant 0 : index
    %c0_3 = arith.constant 0 : index
    %1 = vector.load %arg2[%c0_1, %c0_2, %c0_3] : memref<5x32x32xbf16, #tpu.memory_space<vmem>>, vector<1x32x32xbf16>
    %2 = vector.shape_cast %1 : vector<1x32x32xbf16> to vector<32x32xbf16>
    %3 = vector.extract_strided_slice %2 {offsets = [0, 0], sizes = [16, 32], strides = [1, 1]} : vector<32x32xbf16> to vector<16x32xbf16>
    %4 = arith.truncf %0 : vector<8x16xf32> to vector<8x16xbf16>
    %cst = arith.constant dense<0.000000e+00> : vector<8x32xf32>
    %5 = tpu.matmul %4, %3, %cst {dimension_numbers = #tpu.dot_dimension_numbers<[1], [0], [0], [1], [0, 0, 1, 1], [], []>} : vector<8x16xbf16>, vector<16x32xbf16>, vector<8x32xf32> -> vector<8x32xf32>
    %cst_4 = arith.constant dense<0.000000e+00> : vector<32xf32>
    %6 = vector.multi_reduction <add>, %5, %cst_4 [0] : vector<8x32xf32> to vector<32xf32>
    %7 = vector.shape_cast %6 : vector<32xf32> to vector<1x32xf32>
    %cst_5 = arith.constant 8.000000e+00 : f32
    %8 = vector.broadcast %cst_5 : f32 to vector<1x32xf32>
    %9 = arith.divf %7, %8 : vector<1x32xf32>
    %10 = arith.mulf %5, %5 : vector<8x32xf32>
    %cst_6 = arith.constant dense<0.000000e+00> : vector<32xf32>
    %11 = vector.multi_reduction <add>, %10, %cst_6 [0] : vector<8x32xf32> to vector<32xf32>
    %12 = vector.shape_cast %11 : vector<32xf32> to vector<1x32xf32>
    %cst_7 = arith.constant 8.000000e+00 : f32
    %13 = vector.broadcast %cst_7 : f32 to vector<1x32xf32>
    %14 = arith.divf %12, %13 : vector<1x32xf32>
    %15 = arith.mulf %9, %9 : vector<1x32xf32>
    %16 = arith.subf %14, %15 : vector<1x32xf32>
    %cst_8 = arith.constant 0.000000e+00 : f32
    %17 = vector.broadcast %cst_8 : f32 to vector<1x32xf32>
    %18 = arith.maximumf %16, %17 : vector<1x32xf32>
    %c0_9 = arith.constant 0 : index
    %c0_10 = arith.constant 0 : index
    %19 = vector.load %arg3[%c0_9, %c0_10] : memref<8x128xf32, #tpu.memory_space<vmem>>, vector<1x32xf32>
    %cst_11 = arith.constant 9.99999974E-6 : f32
    %20 = vector.broadcast %cst_11 : f32 to vector<1x32xf32>
    %21 = arith.addf %18, %20 : vector<1x32xf32>
    %22 = math.rsqrt %21 : vector<1x32xf32>
    %23 = arith.mulf %19, %22 : vector<1x32xf32>
    %c1 = arith.constant 1 : index
    %c0_12 = arith.constant 0 : index
    %24 = vector.load %arg3[%c1, %c0_12] : memref<8x128xf32, #tpu.memory_space<vmem>>, vector<1x32xf32>
    %25 = arith.mulf %9, %23 : vector<1x32xf32>
    %26 = arith.subf %24, %25 : vector<1x32xf32>
    %27 = vector.broadcast %23 : vector<1x32xf32> to vector<8x32xf32>
    %28 = arith.mulf %5, %27 : vector<8x32xf32>
    %29 = vector.broadcast %26 : vector<1x32xf32> to vector<8x32xf32>
    %30 = arith.addf %28, %29 : vector<8x32xf32>
    %cst_13 = arith.constant 0.000000e+00 : f32
    %31 = vector.broadcast %cst_13 : f32 to vector<8x32xf32>
    %32 = arith.maximumf %30, %31 : vector<8x32xf32>
    %c1_14 = arith.constant 1 : index
    %c0_15 = arith.constant 0 : index
    %c0_16 = arith.constant 0 : index
    %33 = vector.load %arg2[%c1_14, %c0_15, %c0_16] : memref<5x32x32xbf16, #tpu.memory_space<vmem>>, vector<1x32x32xbf16>
    %34 = vector.shape_cast %33 : vector<1x32x32xbf16> to vector<32x32xbf16>
    %35 = vector.extract_strided_slice %34 {offsets = [0, 0], sizes = [32, 16], strides = [1, 1]} : vector<32x32xbf16> to vector<32x16xbf16>
    %36 = arith.truncf %32 : vector<8x32xf32> to vector<8x32xbf16>
    %cst_17 = arith.constant dense<0.000000e+00> : vector<8x16xf32>
    %37 = tpu.matmul %36, %35, %cst_17 {dimension_numbers = #tpu.dot_dimension_numbers<[1], [0], [0], [1], [0, 0, 1, 1], [], []>} : vector<8x32xbf16>, vector<32x16xbf16>, vector<8x16xf32> -> vector<8x16xf32>
    %c2 = arith.constant 2 : index
    %c0_18 = arith.constant 0 : index
    %38 = vector.load %arg3[%c2, %c0_18] : memref<8x128xf32, #tpu.memory_space<vmem>>, vector<1x16xf32>
    %39 = vector.broadcast %38 : vector<1x16xf32> to vector<8x16xf32>
    %40 = arith.addf %37, %39 : vector<8x16xf32>
    %41 = vector.extract_strided_slice %40 {offsets = [0, 0], sizes = [8, 8], strides = [1, 1]} : vector<8x16xf32> to vector<8x8xf32>
    %42 = vector.extract_strided_slice %40 {offsets = [0, 8], sizes = [8, 8], strides = [1, 1]} : vector<8x16xf32> to vector<8x8xf32>
    %c0_19 = arith.constant 0 : index
    %c0_20 = arith.constant 0 : index
    %43 = vector.load %arg1[%c0_19, %c0_20] : memref<8x8xf32, #tpu.memory_space<vmem>>, vector<8x8xf32>
    %cst_21 = arith.constant 5.000000e-01 : f32
    %44 = vector.broadcast %cst_21 : f32 to vector<8x8xf32>
    %45 = arith.mulf %44, %42 : vector<8x8xf32>
    %46 = math.exp %45 : vector<8x8xf32>
    %47 = arith.mulf %43, %46 : vector<8x8xf32>
    %48 = arith.addf %41, %47 : vector<8x8xf32>
    %49 = tpu.concatenate %40, %48 in 1 : vector<8x16xf32>, vector<8x8xf32> -> vector<8x24xf32>
    %c0_22 = arith.constant 0 : index
    %c0_23 = arith.constant 0 : index
    %50 = vector.load %arg4[%c0_22, %c0_23] : memref<8x24xf32, #tpu.memory_space<vmem>>, vector<8x24xf32>
    tpu.vector_store %arg4[%c0_22, %c0_23], %49 {strides = array<i32>} : memref<8x24xf32, #tpu.memory_space<vmem>>, vector<8x24xf32>,
    %c2_24 = arith.constant 2 : index
    %c0_25 = arith.constant 0 : index
    %c0_26 = arith.constant 0 : index
    %51 = vector.load %arg2[%c2_24, %c0_25, %c0_26] : memref<5x32x32xbf16, #tpu.memory_space<vmem>>, vector<1x32x32xbf16>
    %52 = vector.shape_cast %51 : vector<1x32x32xbf16> to vector<32x32xbf16>
    %53 = vector.extract_strided_slice %52 {offsets = [0, 0], sizes = [8, 32], strides = [1, 1]} : vector<32x32xbf16> to vector<8x32xbf16>
    %54 = arith.truncf %48 : vector<8x8xf32> to vector<8x8xbf16>
    %cst_27 = arith.constant dense<0.000000e+00> : vector<8x32xf32>
    %55 = tpu.matmul %54, %53, %cst_27 {dimension_numbers = #tpu.dot_dimension_numbers<[1], [0], [0], [1], [0, 0, 1, 1], [], []>} : vector<8x8xbf16>, vector<8x32xbf16>, vector<8x32xf32> -> vector<8x32xf32>
    %cst_28 = arith.constant dense<0.000000e+00> : vector<32xf32>
    %56 = vector.multi_reduction <add>, %55, %cst_28 [0] : vector<8x32xf32> to vector<32xf32>
    %57 = vector.shape_cast %56 : vector<32xf32> to vector<1x32xf32>
    %cst_29 = arith.constant 8.000000e+00 : f32
    %58 = vector.broadcast %cst_29 : f32 to vector<1x32xf32>
    %59 = arith.divf %57, %58 : vector<1x32xf32>
    %60 = arith.mulf %55, %55 : vector<8x32xf32>
    %cst_30 = arith.constant dense<0.000000e+00> : vector<32xf32>
    %61 = vector.multi_reduction <add>, %60, %cst_30 [0] : vector<8x32xf32> to vector<32xf32>
    %62 = vector.shape_cast %61 : vector<32xf32> to vector<1x32xf32>
    %cst_31 = arith.constant 8.000000e+00 : f32
    %63 = vector.broadcast %cst_31 : f32 to vector<1x32xf32>
    %64 = arith.divf %62, %63 : vector<1x32xf32>
    %65 = arith.mulf %59, %59 : vector<1x32xf32>
    %66 = arith.subf %64, %65 : vector<1x32xf32>
    %cst_32 = arith.constant 0.000000e+00 : f32
    %67 = vector.broadcast %cst_32 : f32 to vector<1x32xf32>
    %68 = arith.maximumf %66, %67 : vector<1x32xf32>
    %c3 = arith.constant 3 : index
    %c0_33 = arith.constant 0 : index
    %69 = vector.load %arg3[%c3, %c0_33] : memref<8x128xf32, #tpu.memory_space<vmem>>, vector<1x32xf32>
    %cst_34 = arith.constant 9.99999974E-6 : f32
    %70 = vector.broadcast %cst_34 : f32 to vector<1x32xf32>
    %71 = arith.addf %68, %70 : vector<1x32xf32>
    %72 = math.rsqrt %71 : vector<1x32xf32>
    %73 = arith.mulf %69, %72 : vector<1x32xf32>
    %c4 = arith.constant 4 : index
    %c0_35 = arith.constant 0 : index
    %74 = vector.load %arg3[%c4, %c0_35] : memref<8x128xf32, #tpu.memory_space<vmem>>, vector<1x32xf32>
    %75 = arith.mulf %59, %73 : vector<1x32xf32>
    %76 = arith.subf %74, %75 : vector<1x32xf32>
    %77 = vector.broadcast %73 : vector<1x32xf32> to vector<8x32xf32>
    %78 = arith.mulf %55, %77 : vector<8x32xf32>
    %79 = vector.broadcast %76 : vector<1x32xf32> to vector<8x32xf32>
    %80 = arith.addf %78, %79 : vector<8x32xf32>
    %cst_36 = arith.constant 0.000000e+00 : f32
    %81 = vector.broadcast %cst_36 : f32 to vector<8x32xf32>
    %82 = arith.maximumf %80, %81 : vector<8x32xf32>
    %c3_37 = arith.constant 3 : index
    %c0_38 = arith.constant 0 : index
    %c0_39 = arith.constant 0 : index
    %83 = vector.load %arg2[%c3_37, %c0_38, %c0_39] : memref<5x32x32xbf16, #tpu.memory_space<vmem>>, vector<1x32x32xbf16>
    %84 = vector.shape_cast %83 : vector<1x32x32xbf16> to vector<32x32xbf16>
    %85 = vector.extract_strided_slice %84 {offsets = [0, 0], sizes = [32, 16], strides = [1, 1]} : vector<32x32xbf16> to vector<32x16xbf16>
    %86 = arith.truncf %82 : vector<8x32xf32> to vector<8x32xbf16>
    %cst_40 = arith.constant dense<0.000000e+00> : vector<8x16xf32>
    %87 = tpu.matmul %86, %85, %cst_40 {dimension_numbers = #tpu.dot_dimension_numbers<[1], [0], [0], [1], [0, 0, 1, 1], [], []>} : vector<8x32xbf16>, vector<32x16xbf16>, vector<8x16xf32> -> vector<8x16xf32>
    %cst_41 = arith.constant dense<0.000000e+00> : vector<16xf32>
    %88 = vector.multi_reduction <add>, %87, %cst_41 [0] : vector<8x16xf32> to vector<16xf32>
    %89 = vector.shape_cast %88 : vector<16xf32> to vector<1x16xf32>
    %cst_42 = arith.constant 8.000000e+00 : f32
    %90 = vector.broadcast %cst_42 : f32 to vector<1x16xf32>
    %91 = arith.divf %89, %90 : vector<1x16xf32>
    %92 = arith.mulf %87, %87 : vector<8x16xf32>
    %cst_43 = arith.constant dense<0.000000e+00> : vector<16xf32>
    %93 = vector.multi_reduction <add>, %92, %cst_43 [0] : vector<8x16xf32> to vector<16xf32>
    %94 = vector.shape_cast %93 : vector<16xf32> to vector<1x16xf32>
    %cst_44 = arith.constant 8.000000e+00 : f32
    %95 = vector.broadcast %cst_44 : f32 to vector<1x16xf32>
    %96 = arith.divf %94, %95 : vector<1x16xf32>
    %97 = arith.mulf %91, %91 : vector<1x16xf32>
    %98 = arith.subf %96, %97 : vector<1x16xf32>
    %cst_45 = arith.constant 0.000000e+00 : f32
    %99 = vector.broadcast %cst_45 : f32 to vector<1x16xf32>
    %100 = arith.maximumf %98, %99 : vector<1x16xf32>
    %c5 = arith.constant 5 : index
    %c0_46 = arith.constant 0 : index
    %101 = vector.load %arg3[%c5, %c0_46] : memref<8x128xf32, #tpu.memory_space<vmem>>, vector<1x16xf32>
    %cst_47 = arith.constant 9.99999974E-6 : f32
    %102 = vector.broadcast %cst_47 : f32 to vector<1x16xf32>
    %103 = arith.addf %100, %102 : vector<1x16xf32>
    %104 = math.rsqrt %103 : vector<1x16xf32>
    %105 = arith.mulf %101, %104 : vector<1x16xf32>
    %c6 = arith.constant 6 : index
    %c0_48 = arith.constant 0 : index
    %106 = vector.load %arg3[%c6, %c0_48] : memref<8x128xf32, #tpu.memory_space<vmem>>, vector<1x16xf32>
    %107 = arith.mulf %91, %105 : vector<1x16xf32>
    %108 = arith.subf %106, %107 : vector<1x16xf32>
    %109 = vector.broadcast %105 : vector<1x16xf32> to vector<8x16xf32>
    %110 = arith.mulf %87, %109 : vector<8x16xf32>
    %111 = vector.broadcast %108 : vector<1x16xf32> to vector<8x16xf32>
    %112 = arith.addf %110, %111 : vector<8x16xf32>
    %113 = math.tanh %112 : vector<8x16xf32>
    %c4_49 = arith.constant 4 : index
    %c0_50 = arith.constant 0 : index
    %c0_51 = arith.constant 0 : index
    %114 = vector.load %arg2[%c4_49, %c0_50, %c0_51] : memref<5x32x32xbf16, #tpu.memory_space<vmem>>, vector<1x32x32xbf16>
    %115 = vector.shape_cast %114 : vector<1x32x32xbf16> to vector<32x32xbf16>
    %116 = vector.extract_strided_slice %115 {offsets = [0, 0], sizes = [16, 16], strides = [1, 1]} : vector<32x32xbf16> to vector<16x16xbf16>
    %117 = arith.truncf %113 : vector<8x16xf32> to vector<8x16xbf16>
    %cst_52 = arith.constant dense<0.000000e+00> : vector<8x16xf32>
    %118 = tpu.matmul %117, %116, %cst_52 {dimension_numbers = #tpu.dot_dimension_numbers<[1], [0], [0], [1], [0, 0, 1, 1], [], []>} : vector<8x16xbf16>, vector<16x16xbf16>, vector<8x16xf32> -> vector<8x16xf32>
    %c7 = arith.constant 7 : index
    %c0_53 = arith.constant 0 : index
    %119 = vector.load %arg3[%c7, %c0_53] : memref<8x128xf32, #tpu.memory_space<vmem>>, vector<1x16xf32>
    %120 = vector.broadcast %119 : vector<1x16xf32> to vector<8x16xf32>
    %121 = arith.addf %118, %120 : vector<8x16xf32>
    %122 = tpu.concatenate %113, %121 in 1 : vector<8x16xf32>, vector<8x16xf32> -> vector<8x32xf32>
    %c0_54 = arith.constant 0 : index
    %c0_55 = arith.constant 0 : index
    %123 = vector.load %arg5[%c0_54, %c0_55] : memref<8x32xf32, #tpu.memory_space<vmem>>, vector<8x32xf32>
    tpu.vector_store %arg5[%c0_54, %c0_55], %122 {strides = array<i32>} : memref<8x32xf32, #tpu.memory_space<vmem>>, vector<8x32xf32>,
    return
  }
}

</mosaic_0001>

<bundles_post_ra>
// kernel: tpu_custom_call.1
= control target key start
LH: loop header
LB: loop body
LE: loop exit
PB: predicated region body
PF: predicated region fallthrough
CT: control target
= control target key end

     0   :  { %11 = vsyncpa [#allocation3], 0  ;;  %s848_s0 = inlined_call_operand.hbm [shape: f32[8,16], index: 0, kind: input, shape index: {}]   ;;  %s849_s1 = inlined_call_operand.hbm [shape: f32[8,8], index: 1, kind: input, shape index: {}]   ;;  %s850_s2 = inlined_call_operand.hbm [shape: bf16[5,32,32], index: 2, kind: input, shape index: {}]   ;;  %s851_s3 = inlined_call_operand.hbm [shape: f32[8,128], index: 3, kind: input, shape index: {}]   ;;  %s852_s4 = inlined_call_operand.hbm [shape: f32[8,24], index: 4, kind: output, shape index: {0}]   ;;  %s853_s5 = inlined_call_operand.hbm [shape: f32[8,32], index: 5, kind: output, shape index: {1}]  }
   0x1   :  { %12 = vsyncpa [#allocation6], 0 }
   0x2   :  { %13 = vsyncpa [#allocation9], 0 }
   0x3   :  { %14 = vsyncpa [#allocation4], 0 }
   0x4   :  { %15 = vsyncpa [#allocation12], 0  ;;  %s748_s18 = smov [#allocation5]   ;;  %s749_s20 = smov [#allocation2]  }
   0x5   :  { %s32_s19 = sshll.u32 %s748_s18, 4  ;;  %s22_s21 = sshll.u32 %s749_s20, 4  ;;  %s33_s19 = int_to_ptr.vmem [resolvable:$true] %s32_s19  ;;  %s23_s21 = int_to_ptr.vmem [resolvable:$true] %s22_s21 }
   0x6   :  { %s626_s22 = scalar_lea.vmem %s33_s19, 128  ;;  %p631_p1 = scmp.lt.s32.totalorder %s33_s19, %s33_s19 }
   0x7   :  { %p627_p0 = scmp.ne.s32.totalorder %s33_s19, %s626_s22  ;;  %p632_p2 = scmp.lt.s32.totalorder %s626_s22, %s626_s22 }
   0x9   :  { %p633_p3 = por %p632_p2, %p631_p1 }
   0xb   :  { %p634_p4 = pnand %p633_p3, %p627_p0 }
   0xd   :  { %637 = shalt.err (!%p634_p4)
}
   0xe   :  { %35 = dma.hbm_to_vmem [thread:$0]  %s849_s1, 128, %s33_s19, [#allocation6]  }
   0xf   :  { %s646_s25 = scalar_lea.vmem %s23_s21, 128  ;;  %p651_p6 = scmp.lt.s32.totalorder %s23_s21, %s23_s21 }
  0x10   :  { %p647_p5 = scmp.ne.s32.totalorder %s23_s21, %s646_s25  ;;  %p652_p7 = scmp.lt.s32.totalorder %s646_s25, %s646_s25 }
  0x12   :  { %p653_p8 = por %p652_p7, %p651_p6 }
  0x14   :  { %p654_p9 = pnand %p653_p8, %p647_p5 }
  0x16   :  { %657 = shalt.err (!%p654_p9)
}
  0x17   :  { %25 = dma.hbm_to_vmem [thread:$0]  %s848_s0, 128, %s23_s21, [#allocation3]  }
  0x18   :  { %s750_s28 = smov [#allocation7]  }
  0x19   :  { %s41_s29 = sshll.u32 %s750_s28, 4  ;;  %s42_s29 = int_to_ptr.vmem [resolvable:$true] %s41_s29 }
  0x1a   :  { %s666_s30 = scalar_lea.vmem %s42_s29, 1280  ;;  %p671_p11 = scmp.lt.s32.totalorder %s42_s29, %s42_s29 }
  0x1b   :  { %p667_p10 = scmp.ne.s32.totalorder %s42_s29, %s666_s30  ;;  %p672_p12 = scmp.lt.s32.totalorder %s666_s30, %s666_s30 }
  0x1d   :  { %p673_p13 = por %p672_p12, %p671_p11 }
  0x1f   :  { %p674_p0 = pnand %p673_p13, %p667_p10 }
  0x21   :  { %677 = shalt.err (!%p674_p0)
}
  0x22   :  { %s751_s1 = smov 64   ;;  %s752_s6 = smov 4  }
  0x23   :  { %47 = dma.hbm_to_vmem [thread:$0]  %s850_s2, 1280, %s42_s29, [#allocation6], %s751_s1, %s751_s1, %s752_s6  }
  0x24   :  { %s753_s9 = smov [#allocation8]  }
  0x25   :  { %s54_s10 = sshll.u32 %s753_s9, 4  ;;  %s55_s10 = int_to_ptr.vmem [resolvable:$true] %s54_s10 }
  0x26   :  { %s686_s0 = scalar_lea.vmem %s55_s10, 128  ;;  %p691_p2 = scmp.lt.s32.totalorder %s55_s10, %s55_s10 }
  0x27   :  { %p687_p1 = scmp.ne.s32.totalorder %s55_s10, %s686_s0  ;;  %p692_p3 = scmp.lt.s32.totalorder %s686_s0, %s686_s0 }
  0x29   :  { %p693_p4 = por %p692_p3, %p691_p2 }
  0x2b   :  { %p694_p5 = pnand %p693_p4, %p687_p1 }
  0x2d   :  { %697 = shalt.err (!%p694_p5)
}
  0x2e   :  { %57 = dma.hbm_to_vmem [thread:$0]  %s851_s3, 128, %s55_s10, [#allocation9]  }
  0x2f   :  { %738 = dma.done.wait [#allocation3], 128  }
  0x30   :  { %739 = vsyncadd [#allocation3], 4294967168 }
  0x31   :  { %740 = dma.done.wait [#allocation6], 1408  }
  0x32   :  { %741 = vsyncadd [#allocation6], 4294965888 }
  0x33   :  { %742 = dma.done.wait [#allocation9], 128  }
  0x34   :  { %743 = vsyncadd [#allocation9], 4294967168  ;;  %v754_v0 = vmov 0.0   ;;  %vm755_vm0 = vmmov 0   ;;  %v602_v1 = vld [vmem:[#allocation7] sm:$0xff]   ;;  %v71_v2 = vld [vmem:[#allocation2] sm:$0xff]  ;;  %v154_v31 = vlaneseq }
  0x35   :  { %556 = vmatprep.subr.bf16.mxu0 %v754_v0  ;;  %558 = vmatprep.mubr.msk.bf16.mxu0 %vm755_vm0, %v754_v0  ;;  %vm81_vm1 = vcmask 130048   ;;  %v74_v3 = vpack.c.bf16 %v71_v2, %v71_v2  ;;  %v603_v4 = vld [vmem:[#allocation7 + $0x18] sm:$0xff]   ;;  %v604_v5 = vld [vmem:[#allocation7 + $0x10] sm:$0xff]   ;;  %vm125_vm2 = vcmask 261120   ;;  %v249_v46 = vld [vmem:[#allocation7 + $0x20] sm:$0xf] }
  0x36   :  { %562 = vmatprep.subr.bf16.mxu1 %v754_v0  ;;  %566 = vmatprep.mubr.msk.bf16.mxu1 %vm755_vm0, %v754_v0  ;;  %v155_v32 = vshrl.u32 %v154_v31, 7  ;;  %v147_v33 = vld [vmem:[#allocation8] sm:$0x1]  ;;  %v151_v37 = vld [vmem:[#allocation8 + $0x1] sm:$0x1]  ;;  %vm255_vm3 = vcmask 1043456  }
  0x37   :  { %557 = vmatpush3.bf16.msra.mxu0 %v602_v1  ;;  %563 = vmatpush3.bf16.msra.mxu1 %v603_v4  ;;  %v257_v47 = vsel %vm255_vm3, %v249_v46, 0  ;;  %v533_v48 = vld [vmem:[#allocation8 + $0x2] ss:$0 sm:$0xff]  ;;  %s756_s2 = smov 120   ;;  %v231_v57 = vld [vmem:[#allocation5] sm:$0xff]  ;;  %vm251_vm4 = vcmask 64512  }
  0x38   :  { %570 = vmatprep.subr.bf16.mxu0 %v754_v0  ;;  %564 = vmatprep.subr.bf16.mxu1 %v754_v0  ;;  %v816_v34 = vsub.s32 0, %v155_v32  ;;  %s757_s3 = smov 16   ;;  %v605_v62 = vld [vmem:[#allocation7 + $0x38] sm:$0xff]   ;;  %v606_v63 = vld [vmem:[#allocation7 + $0x30] sm:$0xff]   ;;  %vm246_vm5 = vcmask 195584   ;;  %s758_s13 = smov [#allocation10]  }
  0x39   :  { %s506_s14 = sshll.u32 %s758_s13, 4  ;;  %s507_s14 = int_to_ptr.vmem [resolvable:$true] %s506_s14 }
  0x3a   :  { %559 = vmatmul.mubr.msk.bf16.vlgmr.msra.gmra.mxu0 %vm81_vm1, %v74_v3  ;;  %s698_s15 = scalar_lea.vmem %s507_s14, 128  ;;  %p703_p7 = scmp.lt.s32.totalorder %s507_s14, %s507_s14 }
  0x3b   :  { %572 = vmatprep.mubr.msk.bf16.mxu0 %vm755_vm0, %v754_v0  ;;  %565 = vmatpush3.bf16.msra.mxu1 %v604_v5  ;;  %p699_p6 = scmp.ne.s32.totalorder %s507_s14, %s698_s15  ;;  %p704_p8 = scmp.lt.s32.totalorder %s698_s15, %s698_s15 }
  0x3c   :  { %576 = vmatprep.subr.bf16.mxu1 %v754_v0  ;;  %571 = vmatpush3.bf16.msra.mxu0 %v257_v47 }
  0x3d   :  { %584 = vmatprep.subr.bf16.mxu0 %v754_v0  ;;  %p705_p9 = por %p704_p8, %p703_p7 }
  0x3f   :  { %p706_p10 = pnand %p705_p9, %p699_p6 }
  0xfa   :  { %v119_v6 = vpop.f32.mrf.mxu0 }
  0xfb   :  { %v126_v7 = vsel %vm125_vm2, %v119_v6, 0.0  ;;  %v135_v8 = vmul.f32 %v119_v6, %v119_v6 }
  0xfc   :  { %v127_v9 = vrot.slane %v126_v7, 4  ;;  %v560_v10 = vpop.f32.mrf.mxu0 }
  0xfd   :  { %v136_v11 = vsel %vm125_vm2, %v135_v8, 0.0 }
  0xfe   :  { %v128_v12 = vadd.f32 %v127_v9, %v126_v7  ;;  %v137_v13 = vrot.slane %v136_v11, 4  ;;  %v122_v14 = vpop.f32.mrf.mxu0 }
 0x100   :  { %v129_v15 = vrot.slane %v128_v12, 2  ;;  %v138_v16 = vadd.f32 %v137_v13, %v136_v11  ;;  %v561_v17 = vpop.f32.mrf.mxu0 }
 0x102   :  { %v130_v18 = vadd.f32 %v129_v15, %v128_v12  ;;  %v139_v19 = vrot.slane %v138_v16, 2 }
 0x104   :  { %v131_v20 = vrot.slane %v130_v18, 1  ;;  %v140_v21 = vadd.f32 %v139_v19, %v138_v16 }
 0x106   :  { %v132_v22 = vadd.f32 %v131_v20, %v130_v18  ;;  %v141_v23 = vrot.slane %v140_v21, 1 }
 0x108   :  { %v134_v24 = vmul.f32 0.125, %v132_v22  ;;  %v142_v25 = vadd.f32 %v141_v23, %v140_v21 }
 0x10a   :  { %v143_v26 = vmul.f32 0.125, %v142_v25  ;;  %v144_v27 = vmul.f32 %v134_v24, %v134_v24 }
 0x10c   :  { %v145_v28 = vsub.f32 %v143_v26, %v144_v27  ;;  %v319_v27 = vld [vmem:[#allocation8 + $0x3] sm:$0x1] }
 0x10e   :  { %v146_v29 = vmax.f32 %v145_v28, 0.0 }
 0x110   :  { %v148_v30 = vadd.f32 1e-05, %v146_v29 }
 0x112   :  { %608 = vrsqrt.f32 %v148_v30  ;;  %v323_v30 = vld [vmem:[#allocation8 + $0x4] sm:$0x1] }
 0x11f   :  { %v609_v35 = vpop.eup %608 }
 0x120   :  { %v150_v36 = vmul.f32 %v609_v35, %v147_v33 }
 0x122   :  { %v152_v38 = vmul.f32 %v150_v36, %v134_v24  ;;  %v157_v39 = vrot.slane %v150_v36, %v816_v34 }
 0x124   :  { %v153_v40 = vsub.f32 %v151_v37, %v152_v38  ;;  %v158_v41 = vmul.f32 %v157_v39, %v119_v6 }
 0x126   :  { %v162_v42 = vrot.slane %v153_v40, %v816_v34  ;;  %v607_v40 = vld [vmem:[#allocation7 + $0x40] sm:$0xff]  }
 0x128   :  { %v163_v43 = vadd.f32 %v162_v42, %v158_v41 }
 0x12a   :  { %v164_v44 = vmax.f32 %v163_v43, 0.0 }
 0x12c   :  { %v170_v45 = vpack.c.bf16 %v164_v44, %v164_v44 }
 0x12e   :  { %567 = vmatmul.mubr.msk.bf16.vlgmr.msra.gmra.mxu1 %vm125_vm2, %v170_v45 }
 0x12f   :  { %580 = vmatprep.mubr.msk.bf16.mxu1 %vm755_vm0, %v754_v0  ;;  %577 = vmatpush3.bf16.msra.mxu1 %v605_v62 }
 0x130   :  { %578 = vmatprep.subr.bf16.mxu1 %v754_v0 }
 0x133   :  { %579 = vmatpush3.bf16.msra.mxu1 %v606_v63 }
 0x1ee   :  { %v225_v49 = vpop.f32.mrf.mxu1 }
 0x1ef   :  { %v226_v50 = vadd.f32 %v533_v48, %v225_v49 }
 0x1f0   :  { %v568_v51 = vpop.f32.mrf.mxu1 }
 0x1f1   :  { %v232_v52 = vmul.f32 0.5, %v226_v50 }
 0x1f2   :  { %v228_v53 = vpop.f32.mrf.mxu1 }
 0x1f3   :  { %v233_v54 = vmul.f32 1.442695, %v232_v52 }
 0x1f4   :  { %v569_v55 = vpop.f32.mrf.mxu1 }
 0x1f5   :  { %610 = vpow2.f32 %v233_v54 }
 0x202   :  { %v611_v56 = vpop.eup %610 }
 0x203   :  { %236 = vrot.lane.b32.xlu0 %v611_v56, %s756_s2 }
 0x275   :  { %v237_v58 = vpop.permute.xlu0 %236 }
 0x276   :  { %v239_v59 = vmul.f32 %v237_v58, %v231_v57 }
 0x278   :  { %v240_v60 = vadd.f32 %v239_v59, %v226_v50 }
 0x27a   :  { %v250_v61 = vpack.c.bf16 %v240_v60, %v240_v60  ;;  %242 = vrot.lane.b32.xlu0 %v240_v60, %s757_s3 }
 0x27c   :  { %573 = vmatmul.mubr.msk.bf16.vlgmr.msra.gmra.mxu0 %vm251_vm4, %v250_v61 }
 0x27d   :  { %586 = vmatprep.mubr.msk.bf16.mxu0 %vm755_vm0, %v754_v0  ;;  %585 = vmatpush3.bf16.msra.mxu0 %v607_v40 }
 0x2ec   :  { %v243_v1 = vpop.permute.xlu0 %242 }
 0x2ed   :  { %v245_v2 = vsel %vm81_vm1, %v226_v50, %v243_v1 }
 0x2ee   :  { %247 = vst.msk [vmem:[#allocation10] sm:$0xff] %vm246_vm5, %v245_v2 }
 0x33c   :  { %v293_v3 = vpop.f32.mrf.mxu0 }
 0x33d   :  { %v299_v4 = vsel %vm125_vm2, %v293_v3, 0.0  ;;  %v307_v5 = vmul.f32 %v293_v3, %v293_v3 }
 0x33e   :  { %v300_v6 = vrot.slane %v299_v4, 4  ;;  %v574_v7 = vpop.f32.mrf.mxu0 }
 0x33f   :  { %v308_v8 = vsel %vm125_vm2, %v307_v5, 0.0 }
 0x340   :  { %v301_v9 = vadd.f32 %v300_v6, %v299_v4  ;;  %v309_v10 = vrot.slane %v308_v8, 4  ;;  %v296_v11 = vpop.f32.mrf.mxu0  ;;  %v422_v6 = vld [vmem:[#allocation8 + $0x6] sm:$0x1] }
 0x342   :  { %v302_v12 = vrot.slane %v301_v9, 2  ;;  %v310_v0 = vadd.f32 %v309_v10, %v308_v8  ;;  %v575_v13 = vpop.f32.mrf.mxu0 }
 0x344   :  { %v303_v14 = vadd.f32 %v302_v12, %v301_v9  ;;  %v311_v15 = vrot.slane %v310_v0, 2 }
 0x346   :  { %v304_v16 = vrot.slane %v303_v14, 1  ;;  %v312_v17 = vadd.f32 %v311_v15, %v310_v0 }
 0x348   :  { %v305_v18 = vadd.f32 %v304_v16, %v303_v14  ;;  %v313_v19 = vrot.slane %v312_v17, 1 }
 0x34a   :  { %v306_v20 = vmul.f32 0.125, %v305_v18  ;;  %v314_v21 = vadd.f32 %v313_v19, %v312_v17 }
 0x34c   :  { %v315_v22 = vmul.f32 0.125, %v314_v21  ;;  %v316_v23 = vmul.f32 %v306_v20, %v306_v20 }
 0x34e   :  { %v317_v24 = vsub.f32 %v315_v22, %v316_v23 }
 0x350   :  { %v318_v25 = vmax.f32 %v317_v24, 0.0 }
 0x352   :  { %v320_v26 = vadd.f32 1e-05, %v318_v25 }
 0x354   :  { %612 = vrsqrt.f32 %v320_v26 }
 0x361   :  { %v613_v28 = vpop.eup %612 }
 0x362   :  { %v322_v29 = vmul.f32 %v613_v28, %v319_v27 }
 0x364   :  { %v324_v31 = vmul.f32 %v322_v29, %v306_v20  ;;  %v329_v32 = vrot.slane %v322_v29, %v816_v34 }
 0x366   :  { %v325_v33 = vsub.f32 %v323_v30, %v324_v31  ;;  %v330_v35 = vmul.f32 %v329_v32, %v293_v3  ;;  %v418_v3 = vld [vmem:[#allocation8 + $0x5] sm:$0x1] }
 0x368   :  { %v334_v36 = vrot.slane %v325_v33, %v816_v34 }
 0x36a   :  { %v335_v37 = vadd.f32 %v334_v36, %v330_v35 }
 0x36c   :  { %v336_v38 = vmax.f32 %v335_v37, 0.0 }
 0x36e   :  { %v342_v39 = vpack.c.bf16 %v336_v38, %v336_v38 }
 0x370   :  { %581 = vmatmul.mubr.msk.bf16.vlgmr.msra.gmra.mxu1 %vm125_vm2, %v342_v39 }
 0x430   :  { %v392_v41 = vpop.f32.mrf.mxu1 }
 0x431   :  { %v398_v42 = vsel %vm81_vm1, %v392_v41, 0.0  ;;  %v406_v43 = vmul.f32 %v392_v41, %v392_v41 }
 0x432   :  { %v399_v44 = vrot.slane %v398_v42, 4  ;;  %v582_v45 = vpop.f32.mrf.mxu1 }
 0x433   :  { %v407_v46 = vsel %vm81_vm1, %v406_v43, 0.0 }
 0x434   :  { %v400_v47 = vadd.f32 %v399_v44, %v398_v42  ;;  %v408_v48 = vrot.slane %v407_v46, 4  ;;  %v395_v49 = vpop.f32.mrf.mxu1 }
 0x436   :  { %v401_v50 = vrot.slane %v400_v47, 2  ;;  %v409_v51 = vadd.f32 %v408_v48, %v407_v46  ;;  %v583_v52 = vpop.f32.mrf.mxu1 }
 0x438   :  { %v402_v53 = vadd.f32 %v401_v50, %v400_v47  ;;  %v410_v54 = vrot.slane %v409_v51, 2 }
 0x43a   :  { %v403_v55 = vrot.slane %v402_v53, 1  ;;  %v411_v56 = vadd.f32 %v410_v54, %v409_v51 }
 0x43c   :  { %v404_v57 = vadd.f32 %v403_v55, %v402_v53  ;;  %v412_v58 = vrot.slane %v411_v56, 1 }
 0x43e   :  { %v405_v59 = vmul.f32 0.125, %v404_v57  ;;  %v413_v60 = vadd.f32 %v412_v58, %v411_v56 }
 0x440   :  { %v414_v61 = vmul.f32 0.125, %v413_v60  ;;  %v415_v62 = vmul.f32 %v405_v59, %v405_v59 }
 0x442   :  { %v416_v63 = vsub.f32 %v414_v61, %v415_v62 }
 0x444   :  { %v417_v1 = vmax.f32 %v416_v63, 0.0 }
 0x446   :  { %v419_v2 = vadd.f32 1e-05, %v417_v1 }
 0x448   :  { %614 = vrsqrt.f32 %v419_v2 }
 0x455   :  { %v615_v4 = vpop.eup %614 }
 0x456   :  { %v421_v5 = vmul.f32 %v615_v4, %v418_v3 }
 0x458   :  { %v423_v7 = vmul.f32 %v421_v5, %v405_v59  ;;  %v428_v8 = vrot.slane %v421_v5, %v816_v34 }
 0x45a   :  { %v424_v9 = vsub.f32 %v422_v6, %v423_v7  ;;  %v429_v10 = vmul.f32 %v428_v8, %v392_v41 }
 0x45c   :  { %v433_v11 = vrot.slane %v424_v9, %v816_v34 }
 0x45e   :  { %v434_v12 = vadd.f32 %v433_v11, %v429_v10 }
 0x460   :  { %616 = vtanh.f32 %v434_v12 }
 0x46d   :  { %v617_v0 = vpop.eup %616 }
 0x46e   :  { %v439_v13 = vpack.c.bf16 %v617_v0, %v617_v0 }
 0x470   :  { %587 = vmatmul.mubr.msk.bf16.vlgmr.msra.gmra.mxu0 %vm81_vm1, %v439_v13 }
 0x471   :  { %709 = shalt.err (!%p706_p10)
}
 0x472   :  { %509 = dma.vmem_to_hbm [thread:$0]  %s507_s14, 128, %s852_s4, [#allocation4]   ;;  %v541_v34 = vld [vmem:[#allocation8 + $0x7] ss:$0 sm:$0xff] }
 0x473   :  { %s759_s18 = smov [#allocation11]  }
 0x474   :  { %s516_s19 = sshll.u32 %s759_s18, 4  ;;  %s517_s19 = int_to_ptr.vmem [resolvable:$true] %s516_s19 }
 0x475   :  { %s718_s20 = scalar_lea.vmem %s517_s19, 128  ;;  %p723_p12 = scmp.lt.s32.totalorder %s517_s19, %s517_s19 }
 0x476   :  { %p719_p11 = scmp.ne.s32.totalorder %s517_s19, %s718_s20  ;;  %p724_p13 = scmp.lt.s32.totalorder %s718_s20, %s718_s20 }
 0x478   :  { %p725_p0 = por %p724_p13, %p723_p12 }
 0x47a   :  { %p726_p1 = pnand %p725_p0, %p719_p11 }
 0x530   :  { %v488_v14 = vpop.f32.mrf.mxu0 }
 0x531   :  { %v489_v15 = vadd.f32 %v541_v34, %v488_v14 }
 0x532   :  { %v588_v16 = vpop.f32.mrf.mxu0 }
 0x533   :  { %495 = vrot.lane.b32.xlu1 %v489_v15, %s757_s3 }
 0x534   :  { %v491_v17 = vpop.f32.mrf.mxu0 }
 0x536   :  { %v589_v18 = vpop.f32.mrf.mxu0 }
 0x5a5   :  { %v496_v19 = vpop.permute.xlu1 %495 }
 0x5a6   :  { %v498_v20 = vsel %vm81_vm1, %v617_v0, %v496_v19 }
 0x5a7   :  { %499 = vst.msk [vmem:[#allocation11] sm:$0xff] %vm125_vm2, %v498_v20 }
 0x5a8   :  { %729 = shalt.err (!%p726_p1)
}
 0x5a9   :  { %519 = dma.vmem_to_hbm [thread:$0]  %s517_s19, 128, %s853_s5, [#allocation12]  }
 0x5aa   :  { %744 = dma.done.wait [#allocation4], 128  }
 0x5ab   :  { %745 = vsyncadd [#allocation4], 4294967168 }
 0x5ac   :  { %746 = dma.done.wait [#allocation12], 128  }
 0x5ad   :  { %747 = vsyncadd [#allocation12], 4294967168 }
 0x5ae   :  { %526 = vsyncpa [#allocation3], 1 }
 0x5af   :  { %527 = vsyncpa [#allocation6], 1 }
 0x5b0   :  { %528 = vsyncpa [#allocation9], 1 }
 0x5b1   :  { %529 = vsyncpa [#allocation4], 1 }
 0x5b2   :  { %530 = vsyncpa [#allocation12], 1 }

</bundles_post_ra>
